<compile_context>
chip_gen: v5e
topology: v5e:2x2
jax: 0.10.0
libtpu: 0.0.40
codegen_flags: <defaults>
</compile_context>

<pallas_src>
import functools
import math

import jax
import jax.numpy as jnp
from jax.experimental import pallas as pl
from jax.experimental.pallas import tpu as pltpu


def _perceiver_attention_kernel(x_ref, lat_ref,
                                ln1w_ref, ln1b_ref, ln2w_ref, ln2b_ref,
                                wq_ref, wk_ref, wv_ref, wo_ref,
                                o_ref, *, heads, dim_head):
    """One grid step == one batch element.

    All matmuls hit the MXU with bf16 operands and f32 accumulation; heads are
    processed with batched dot_generals (heads == batch dim), not a Python loop.
    """
    f32 = jnp.float32
    cdt = wq_ref.dtype          # bf16 compute dtype for MXU operands
    eps = 1e-5
    inner = heads * dim_head

    def layer_norm(v, w, b):
        mu = jnp.mean(v, axis=-1, keepdims=True)
        var = jnp.mean((v - mu) ** 2, axis=-1, keepdims=True)
        return (v - mu) * jax.lax.rsqrt(var + eps) * w + b

    xn = layer_norm(x_ref[...].astype(f32), ln1w_ref[...], ln1b_ref[...])    # (N1, D) f32
    ltn = layer_norm(lat_ref[...].astype(f32), ln2w_ref[...], ln2b_ref[...])  # (N2, D) f32

    n2 = ltn.shape[0]
    # kv tokens = [image tokens ; latents]  (sublane-axis concat of f32 tiles).
    # TODO(synk): for very long image-token sequences, replace this resident KV with a
    # KV-tiled flash-style online softmax so VMEM stays O(tile) instead of O(N1).
    kvn = jnp.concatenate([xn, ltn], axis=0)                                  # (NK, D) f32
    nk = kvn.shape[0]

    lat_b = ltn.astype(cdt)
    kv_b = kvn.astype(cdt)

    # --- Projections, fused over all heads (bf16 in, f32 accumulation).
    # Weights arrive pre-transposed as (inner, D); contracting the lane dims of both
    # operands ("A @ B^T" form) yields the result already as (inner, n_tokens), so the
    # head split below is a leading-dim reshape (minor dim untouched).
    def proj_t(w_ref, tok):                                                   # -> (inner, T) f32
        return jax.lax.dot_general(w_ref[...], tok, (((1,), (1,)), ((), ())),
                                   preferred_element_type=f32)

    # Fold both dim_head**-0.25 factors into q: one multiply total.
    q_t = proj_t(wq_ref, lat_b) * (1.0 / math.sqrt(dim_head))                 # (inner, N2)
    k_t = proj_t(wk_ref, kv_b)                                                # (inner, NK)
    v_t = proj_t(wv_ref, kv_b)                                                # (inner, NK)

    # --- Head split (heads becomes the batch dim of the attention matmuls).
    q3 = jnp.swapaxes(q_t.reshape(heads, dim_head, n2), 1, 2).astype(cdt)     # (H, N2, dh)
    k3 = k_t.reshape(heads, dim_head, nk).astype(cdt)                         # (H, dh, NK)
    v3 = v_t.reshape(heads, dim_head, nk).astype(cdt)                         # (H, dh, NK)

    # --- Attention scores for all heads in one batched matmul (canonical NN form).
    s = jax.lax.dot_general(q3, k3, (((2,), (1,)), ((0,), (0,))),
                            preferred_element_type=f32)                       # (H, N2, NK) f32

    # --- Softmax in f32; divide via the EUP reciprocal (free VLIW slot).
    s = s - jnp.max(s, axis=-1, keepdims=True)
    e = jnp.exp(s)
    p = e * pl.reciprocal(jnp.sum(e, axis=-1, keepdims=True), approx=True)

    # --- P @ V for all heads in one batched matmul ("A @ B^T" form), producing the
    # result directly in (H, dh, N2) layout so merging heads back is a free reshape.
    out_t = jax.lax.dot_general(v3, p.astype(cdt), (((2,), (2,)), ((0,), (0,))),
                                preferred_element_type=f32)                   # (H, dh, N2)
    out2 = out_t.reshape(inner, n2).T.astype(cdt)                             # (N2, inner)

    # --- Output projection, single lane-dense store of the (N2, D) block.
    o_ref[...] = jnp.dot(out2, wo_ref[...],
                         preferred_element_type=f32).astype(o_ref.dtype)


def perceiver_attention(x, latents, params, *, heads, dim_head,
                        compute_dtype=jnp.bfloat16):
    B, N1, D = x.shape
    _, N2, _ = latents.shape
    inner = heads * dim_head

    # Weight layout / dtype prep happens once, outside the kernel:
    #   * (inner, D) "transposed" layout for the q/k/v projections,
    #   * bf16 MXU operands (halves weight VMEM, doubles MXU throughput),
    #   * f32 layernorm affine params.
    wq_t = params["wq"].T.astype(compute_dtype)        # (inner, D)
    wk_t = params["wk"].T.astype(compute_dtype)        # (inner, D)
    wv_t = params["wv"].T.astype(compute_dtype)        # (inner, D)
    wo = params["wo"].astype(compute_dtype)            # (inner, D) already
    ln1w = params["ln1_w"].astype(jnp.float32)
    ln1b = params["ln1_b"].astype(jnp.float32)
    ln2w = params["ln2_w"].astype(jnp.float32)
    ln2b = params["ln2_b"].astype(jnp.float32)

    kernel = functools.partial(_perceiver_attention_kernel,
                               heads=heads, dim_head=dim_head)

    def rep(shape):
        # Whole-array operand, same block every grid step (constant index_map).
        return pl.BlockSpec(shape, lambda b: (0,) * len(shape))

    return pl.pallas_call(
        kernel,
        out_shape=jax.ShapeDtypeStruct((B, N2, D), x.dtype),
        grid=(B,),
        in_specs=[
            pl.BlockSpec((None, N1, D), lambda b: (b, 0, 0)),   # x (batch squeezed)
            pl.BlockSpec((None, N2, D), lambda b: (b, 0, 0)),   # latents
            rep((1, D)), rep((1, D)),                           # layernorm 1 (w, b)
            rep((1, D)), rep((1, D)),                           # layernorm 2 (w, b)
            rep((inner, D)),                                    # Wq^T
            rep((inner, D)),                                    # Wk^T
            rep((inner, D)),                                    # Wv^T
            rep((inner, D)),                                    # Wo
        ],
        out_specs=pl.BlockSpec((None, N2, D), lambda b: (b, 0, 0)),
        compiler_params=pltpu.CompilerParams(
            dimension_semantics=("parallel",),          # batch elements independent
            vmem_limit_bytes=32 * 1024 * 1024),
    )(x, latents, ln1w, ln1b, ln2w, ln2b, wq_t, wk_t, wv_t, wo)


def perceiver_attention_reference(x, latents, params, *, heads, dim_head):
    """Pure-JAX f32 reference mirroring the PyTorch forward exactly."""
    eps = 1e-5

    def ln(v, w, b):
        mu = v.mean(-1, keepdims=True)
        var = ((v - mu) ** 2).mean(-1, keepdims=True)
        return (v - mu) / jnp.sqrt(var + eps) * w + b

    xn = ln(x, params["ln1_w"][0], params["ln1_b"][0])
    lt = ln(latents, params["ln2_w"][0], params["ln2_b"][0])
    b, l, _ = lt.shape
    q = lt @ params["wq"]
    kv = jnp.concatenate([xn, lt], axis=1)
    k = kv @ params["wk"]
    v = kv @ params["wv"]

    def rs(t):  # reshape_tensor
        bs, L, W = t.shape
        return t.reshape(bs, L, heads, -1).transpose(0, 2, 1, 3)

    qh, kh, vh = rs(q), rs(k), rs(v)
    scale = 1.0 / math.sqrt(math.sqrt(dim_head))
    w = jnp.einsum('bhqd,bhkd->bhqk', qh * scale, kh * scale)
    w = jax.nn.softmax(w.astype(jnp.float32), axis=-1)
    out = jnp.einsum('bhqk,bhkd->bhqd', w, vh)
    out = out.transpose(0, 2, 1, 3).reshape(b, l, -1)
    return out @ params["wo"]


def init_params(key, dim, heads, dim_head):
    inner = heads * dim_head
    k1, k2, k3, k4, k5 = jax.random.split(key, 5)
    wkv = 0.05 * jax.random.normal(k2, (dim, 2 * inner), jnp.float32)
    return {
        # LayerNorm affine params (non-trivial so the test exercises them)
        "ln1_w": 1.0 + 0.1 * jax.random.normal(k4, (1, dim), jnp.float32),
        "ln1_b": 0.1 * jax.random.normal(k5, (1, dim), jnp.float32),
        "ln2_w": 1.0 - 0.1 * jax.random.normal(k5, (1, dim), jnp.float32),
        "ln2_b": 0.1 * jax.random.normal(k4, (1, dim), jnp.float32),
        # Linear weights, stored as (in, out) so y = x @ W
        "wq": 0.05 * jax.random.normal(k1, (dim, inner), jnp.float32),
        "wk": wkv[:, :inner],
        "wv": wkv[:, inner:],
        "wo": 0.05 * jax.random.normal(k3, (inner, dim), jnp.float32),
    }


if __name__ == "__main__":
    B, N1, N2, D = 2, 16, 8, 32
    HEADS, DIM_HEAD = 4, 8

    key = jax.random.PRNGKey(0)
    kx, kl, kp = jax.random.split(key, 3)
    x = jax.random.normal(kx, (B, N1, D), jnp.float32)
    latents = jax.random.normal(kl, (B, N2, D), jnp.float32)
    params = init_params(kp, D, HEADS, DIM_HEAD)

    out = perceiver_attention(x, latents, params, heads=HEADS, dim_head=DIM_HEAD)
    out = jax.block_until_ready(out)

    ref = perceiver_attention_reference(x, latents, params,
                                        heads=HEADS, dim_head=DIM_HEAD)
    ref = jax.block_until_ready(ref)

    assert out.shape == (B, N2, D), out.shape
    if not bool(jnp.allclose(out, ref, atol=2e-2, rtol=2e-2)):
        raise AssertionError("Pallas output does not match JAX reference")
    print("KERNEL_OK")
</pallas_src>

<mosaic_0001>
module attributes {stable_mosaic.version = 11 : i64} {
  func.func @_perceiver_attention_kernel(%arg0: i32, %arg1: memref<1x16x32xf32, #tpu.memory_space<vmem>>, %arg2: memref<1x8x32xf32, #tpu.memory_space<vmem>>, %arg3: memref<1x32xf32, #tpu.memory_space<vmem>>, %arg4: memref<1x32xf32, #tpu.memory_space<vmem>>, %arg5: memref<1x32xf32, #tpu.memory_space<vmem>>, %arg6: memref<1x32xf32, #tpu.memory_space<vmem>>, %arg7: memref<32x32xbf16, #tpu.memory_space<vmem>>, %arg8: memref<32x32xbf16, #tpu.memory_space<vmem>>, %arg9: memref<32x32xbf16, #tpu.memory_space<vmem>>, %arg10: memref<32x32xbf16, #tpu.memory_space<vmem>>, %arg11: memref<1x8x32xf32, #tpu.memory_space<vmem>>) attributes {dimension_semantics = [#tpu.dimension_semantics<parallel>], iteration_bounds = array<i64: 2>, scalar_prefetch = 0 : i64, scratch_operands = 0 : i64, tpu.core_type = #tpu.core_type<tc>, window_params = [{transform_indices = @transform_0, window_bounds = array<i64: 1, 16, 32>}, {transform_indices = @transform_1, window_bounds = array<i64: 1, 8, 32>}, {pipeline_mode = #tpu.pipeline_mode<synchronous>, transform_indices = @transform_2, window_bounds = array<i64: 1, 32>}, {pipeline_mode = #tpu.pipeline_mode<synchronous>, transform_indices = @transform_3, window_bounds = array<i64: 1, 32>}, {pipeline_mode = #tpu.pipeline_mode<synchronous>, transform_indices = @transform_4, window_bounds = array<i64: 1, 32>}, {pipeline_mode = #tpu.pipeline_mode<synchronous>, transform_indices = @transform_5, window_bounds = array<i64: 1, 32>}, {pipeline_mode = #tpu.pipeline_mode<synchronous>, transform_indices = @transform_6, window_bounds = array<i64: 32, 32>}, {pipeline_mode = #tpu.pipeline_mode<synchronous>, transform_indices = @transform_7, window_bounds = array<i64: 32, 32>}, {pipeline_mode = #tpu.pipeline_mode<synchronous>, transform_indices = @transform_8, window_bounds = array<i64: 32, 32>}, {pipeline_mode = #tpu.pipeline_mode<synchronous>, transform_indices = @transform_9, window_bounds = array<i64: 32, 32>}, {transform_indices = @transform_10, window_bounds = array<i64: 1, 8, 32>}]} {
    %c0 = arith.constant 0 : index
    %c0_0 = arith.constant 0 : index
    %c0_1 = arith.constant 0 : index
    %0 = vector.load %arg1[%c0, %c0_0, %c0_1] : memref<1x16x32xf32, #tpu.memory_space<vmem>>, vector<1x16x32xf32>
    %1 = vector.shape_cast %0 : vector<1x16x32xf32> to vector<16x32xf32>
    %c0_2 = arith.constant 0 : index
    %c0_3 = arith.constant 0 : index
    %2 = vector.load %arg3[%c0_2, %c0_3] : memref<1x32xf32, #tpu.memory_space<vmem>>, vector<1x32xf32>
    %c0_4 = arith.constant 0 : index
    %c0_5 = arith.constant 0 : index
    %3 = vector.load %arg4[%c0_4, %c0_5] : memref<1x32xf32, #tpu.memory_space<vmem>>, vector<1x32xf32>
    %cst = arith.constant dense<0.000000e+00> : vector<16xf32>
    %4 = vector.multi_reduction <add>, %1, %cst [1] : vector<16x32xf32> to vector<16xf32>
    %5 = vector.shape_cast %4 : vector<16xf32> to vector<16x1xf32>
    %cst_6 = arith.constant 3.200000e+01 : f32
    %6 = vector.broadcast %cst_6 : f32 to vector<16x1xf32>
    %7 = arith.divf %5, %6 : vector<16x1xf32>
    %8 = vector.broadcast %7 : vector<16x1xf32> to vector<16x32xf32>
    %9 = arith.subf %1, %8 : vector<16x32xf32>
    %10 = arith.mulf %9, %9 : vector<16x32xf32>
    %cst_7 = arith.constant dense<0.000000e+00> : vector<16xf32>
    %11 = vector.multi_reduction <add>, %10, %cst_7 [1] : vector<16x32xf32> to vector<16xf32>
    %12 = vector.shape_cast %11 : vector<16xf32> to vector<16x1xf32>
    %cst_8 = arith.constant 3.200000e+01 : f32
    %13 = vector.broadcast %cst_8 : f32 to vector<16x1xf32>
    %14 = arith.divf %12, %13 : vector<16x1xf32>
    %15 = vector.broadcast %7 : vector<16x1xf32> to vector<16x32xf32>
    %16 = arith.subf %1, %15 : vector<16x32xf32>
    %cst_9 = arith.constant 9.99999974E-6 : f32
    %17 = vector.broadcast %cst_9 : f32 to vector<16x1xf32>
    %18 = arith.addf %14, %17 : vector<16x1xf32>
    %19 = math.rsqrt %18 : vector<16x1xf32>
    %20 = vector.broadcast %19 : vector<16x1xf32> to vector<16x32xf32>
    %21 = arith.mulf %16, %20 : vector<16x32xf32>
    %22 = vector.broadcast %2 : vector<1x32xf32> to vector<16x32xf32>
    %23 = arith.mulf %21, %22 : vector<16x32xf32>
    %24 = vector.broadcast %3 : vector<1x32xf32> to vector<16x32xf32>
    %25 = arith.addf %23, %24 : vector<16x32xf32>
    %c0_10 = arith.constant 0 : index
    %c0_11 = arith.constant 0 : index
    %c0_12 = arith.constant 0 : index
    %26 = vector.load %arg2[%c0_10, %c0_11, %c0_12] : memref<1x8x32xf32, #tpu.memory_space<vmem>>, vector<1x8x32xf32>
    %27 = vector.shape_cast %26 : vector<1x8x32xf32> to vector<8x32xf32>
    %c0_13 = arith.constant 0 : index
    %c0_14 = arith.constant 0 : index
    %28 = vector.load %arg5[%c0_13, %c0_14] : memref<1x32xf32, #tpu.memory_space<vmem>>, vector<1x32xf32>
    %c0_15 = arith.constant 0 : index
    %c0_16 = arith.constant 0 : index
    %29 = vector.load %arg6[%c0_15, %c0_16] : memref<1x32xf32, #tpu.memory_space<vmem>>, vector<1x32xf32>
    %cst_17 = arith.constant dense<0.000000e+00> : vector<8xf32>
    %30 = vector.multi_reduction <add>, %27, %cst_17 [1] : vector<8x32xf32> to vector<8xf32>
    %31 = vector.shape_cast %30 : vector<8xf32> to vector<8x1xf32>
    %cst_18 = arith.constant 3.200000e+01 : f32
    %32 = vector.broadcast %cst_18 : f32 to vector<8x1xf32>
    %33 = arith.divf %31, %32 : vector<8x1xf32>
    %34 = vector.broadcast %33 : vector<8x1xf32> to vector<8x32xf32>
    %35 = arith.subf %27, %34 : vector<8x32xf32>
    %36 = arith.mulf %35, %35 : vector<8x32xf32>
    %cst_19 = arith.constant dense<0.000000e+00> : vector<8xf32>
    %37 = vector.multi_reduction <add>, %36, %cst_19 [1] : vector<8x32xf32> to vector<8xf32>
    %38 = vector.shape_cast %37 : vector<8xf32> to vector<8x1xf32>
    %cst_20 = arith.constant 3.200000e+01 : f32
    %39 = vector.broadcast %cst_20 : f32 to vector<8x1xf32>
    %40 = arith.divf %38, %39 : vector<8x1xf32>
    %41 = vector.broadcast %33 : vector<8x1xf32> to vector<8x32xf32>
    %42 = arith.subf %27, %41 : vector<8x32xf32>
    %cst_21 = arith.constant 9.99999974E-6 : f32
    %43 = vector.broadcast %cst_21 : f32 to vector<8x1xf32>
    %44 = arith.addf %40, %43 : vector<8x1xf32>
    %45 = math.rsqrt %44 : vector<8x1xf32>
    %46 = vector.broadcast %45 : vector<8x1xf32> to vector<8x32xf32>
    %47 = arith.mulf %42, %46 : vector<8x32xf32>
    %48 = vector.broadcast %28 : vector<1x32xf32> to vector<8x32xf32>
    %49 = arith.mulf %47, %48 : vector<8x32xf32>
    %50 = vector.broadcast %29 : vector<1x32xf32> to vector<8x32xf32>
    %51 = arith.addf %49, %50 : vector<8x32xf32>
    %52 = tpu.concatenate %25, %51 in 0 : vector<16x32xf32>, vector<8x32xf32> -> vector<24x32xf32>
    %53 = arith.truncf %51 : vector<8x32xf32> to vector<8x32xbf16>
    %54 = arith.truncf %52 : vector<24x32xf32> to vector<24x32xbf16>
    %c0_22 = arith.constant 0 : index
    %c0_23 = arith.constant 0 : index
    %55 = vector.load %arg7[%c0_22, %c0_23] : memref<32x32xbf16, #tpu.memory_space<vmem>>, vector<32x32xbf16>
    %cst_24 = arith.constant dense<0.000000e+00> : vector<32x8xf32>
    %56 = tpu.matmul %55, %53, %cst_24 {dimension_numbers = #tpu.dot_dimension_numbers<[1], [1], [0], [0], [0, 0, 1, 0], [], []>} : vector<32x32xbf16>, vector<8x32xbf16>, vector<32x8xf32> -> vector<32x8xf32>
    %cst_25 = arith.constant 0.353553385 : f32
    %57 = vector.broadcast %cst_25 : f32 to vector<32x8xf32>
    %58 = arith.mulf %56, %57 : vector<32x8xf32>
    %c0_26 = arith.constant 0 : index
    %c0_27 = arith.constant 0 : index
    %59 = vector.load %arg8[%c0_26, %c0_27] : memref<32x32xbf16, #tpu.memory_space<vmem>>, vector<32x32xbf16>
    %cst_28 = arith.constant dense<0.000000e+00> : vector<32x24xf32>
    %60 = tpu.matmul %59, %54, %cst_28 {dimension_numbers = #tpu.dot_dimension_numbers<[1], [1], [0], [0], [0, 0, 1, 0], [], []>} : vector<32x32xbf16>, vector<24x32xbf16>, vector<32x24xf32> -> vector<32x24xf32>
    %c0_29 = arith.constant 0 : index
    %c0_30 = arith.constant 0 : index
    %61 = vector.load %arg9[%c0_29, %c0_30] : memref<32x32xbf16, #tpu.memory_space<vmem>>, vector<32x32xbf16>
    %cst_31 = arith.constant dense<0.000000e+00> : vector<32x24xf32>
    %62 = tpu.matmul %61, %54, %cst_31 {dimension_numbers = #tpu.dot_dimension_numbers<[1], [1], [0], [0], [0, 0, 1, 0], [], []>} : vector<32x32xbf16>, vector<24x32xbf16>, vector<32x24xf32> -> vector<32x24xf32>
    %63 = vector.shape_cast %58 : vector<32x8xf32> to vector<4x8x8xf32>
    %64 = tpu.transpose %63, [0, 2, 1] : vector<4x8x8xf32> -> vector<4x8x8xf32>
    %65 = arith.truncf %64 : vector<4x8x8xf32> to vector<4x8x8xbf16>
    %66 = vector.shape_cast %60 : vector<32x24xf32> to vector<4x8x24xf32>
    %67 = arith.truncf %66 : vector<4x8x24xf32> to vector<4x8x24xbf16>
    %68 = vector.shape_cast %62 : vector<32x24xf32> to vector<4x8x24xf32>
    %69 = arith.truncf %68 : vector<4x8x24xf32> to vector<4x8x24xbf16>
    %cst_32 = arith.constant dense<0.000000e+00> : vector<4x8x24xf32>
    %70 = tpu.matmul %65, %67, %cst_32 {dimension_numbers = #tpu.dot_dimension_numbers<[2], [1], [1], [2], [0, 0, 0, 1, 1, 2], [0], [0]>} : vector<4x8x8xbf16>, vector<4x8x24xbf16>, vector<4x8x24xf32> -> vector<4x8x24xf32>
    %cst_33 = arith.constant dense<0xFF800000> : vector<4x8xf32>
    %71 = vector.multi_reduction <maximumf>, %70, %cst_33 [2] : vector<4x8x24xf32> to vector<4x8xf32>
    %72 = vector.shape_cast %71 : vector<4x8xf32> to vector<4x8x1xf32>
    %73 = vector.broadcast %72 : vector<4x8x1xf32> to vector<4x8x24xf32>
    %74 = arith.subf %70, %73 : vector<4x8x24xf32>
    %75 = math.exp %74 : vector<4x8x24xf32>
    %cst_34 = arith.constant dense<0.000000e+00> : vector<4x8xf32>
    %76 = vector.multi_reduction <add>, %75, %cst_34 [2] : vector<4x8x24xf32> to vector<4x8xf32>
    %77 = vector.shape_cast %76 : vector<4x8xf32> to vector<4x8x1xf32>
    %78 = tpu.reciprocal %77 {approx = true} : vector<4x8x1xf32> -> vector<4x8x1xf32>
    %79 = vector.broadcast %78 : vector<4x8x1xf32> to vector<4x8x24xf32>
    %80 = arith.mulf %75, %79 : vector<4x8x24xf32>
    %81 = arith.truncf %80 : vector<4x8x24xf32> to vector<4x8x24xbf16>
    %cst_35 = arith.constant dense<0.000000e+00> : vector<4x8x8xf32>
    %82 = tpu.matmul %69, %81, %cst_35 {dimension_numbers = #tpu.dot_dimension_numbers<[2], [2], [1], [1], [0, 0, 0, 1, 1, 1], [0], [0]>} : vector<4x8x24xbf16>, vector<4x8x24xbf16>, vector<4x8x8xf32> -> vector<4x8x8xf32>
    %83 = vector.shape_cast %82 : vector<4x8x8xf32> to vector<32x8xf32>
    %84 = tpu.transpose %83, [1, 0] : vector<32x8xf32> -> vector<8x32xf32>
    %85 = arith.truncf %84 : vector<8x32xf32> to vector<8x32xbf16>
    %c0_36 = arith.constant 0 : index
    %c0_37 = arith.constant 0 : index
    %86 = vector.load %arg10[%c0_36, %c0_37] : memref<32x32xbf16, #tpu.memory_space<vmem>>, vector<32x32xbf16>
    %cst_38 = arith.constant dense<0.000000e+00> : vector<8x32xf32>
    %87 = tpu.matmul %85, %86, %cst_38 {dimension_numbers = #tpu.dot_dimension_numbers<[1], [0], [0], [1], [0, 0, 1, 1], [], []>} : vector<8x32xbf16>, vector<32x32xbf16>, vector<8x32xf32> -> vector<8x32xf32>
    %c0_39 = arith.constant 0 : index
    %c0_40 = arith.constant 0 : index
    %c0_41 = arith.constant 0 : index
    %88 = vector.load %arg11[%c0_39, %c0_40, %c0_41] : memref<1x8x32xf32, #tpu.memory_space<vmem>>, vector<1x8x32xf32>
    %89 = vector.shape_cast %88 : vector<1x8x32xf32> to vector<8x32xf32>
    %90 = vector.shape_cast %87 : vector<8x32xf32> to vector<1x8x32xf32>
    tpu.vector_store %arg11[%c0_39, %c0_40, %c0_41], %90 {strides = array<i32>} : memref<1x8x32xf32, #tpu.memory_space<vmem>>, vector<1x8x32xf32>,
    return
  }
  func.func @transform_0(%arg0: i32) -> (i32, i32, i32) {
    %c0_i32 = arith.constant 0 : i32
    %c0_i32_0 = arith.constant 0 : i32
    %c0_i32_1 = arith.constant 0 : i32
    return %arg0, %c0_i32, %c0_i32_0 : i32, i32, i32
  }
  func.func @transform_1(%arg0: i32) -> (i32, i32, i32) {
    %c0_i32 = arith.constant 0 : i32
    %c0_i32_0 = arith.constant 0 : i32
    %c0_i32_1 = arith.constant 0 : i32
    return %arg0, %c0_i32, %c0_i32_0 : i32, i32, i32
  }
  func.func @transform_2(%arg0: i32) -> (i32, i32) {
    %c0_i32 = arith.constant 0 : i32
    %c0_i32_0 = arith.constant 0 : i32
    %c0_i32_1 = arith.constant 0 : i32
    return %c0_i32, %c0_i32_0 : i32, i32
  }
  func.func @transform_3(%arg0: i32) -> (i32, i32) {
    %c0_i32 = arith.constant 0 : i32
    %c0_i32_0 = arith.constant 0 : i32
    %c0_i32_1 = arith.constant 0 : i32
    return %c0_i32, %c0_i32_0 : i32, i32
  }
  func.func @transform_4(%arg0: i32) -> (i32, i32) {
    %c0_i32 = arith.constant 0 : i32
    %c0_i32_0 = arith.constant 0 : i32
    %c0_i32_1 = arith.constant 0 : i32
    return %c0_i32, %c0_i32_0 : i32, i32
  }
  func.func @transform_5(%arg0: i32) -> (i32, i32) {
    %c0_i32 = arith.constant 0 : i32
    %c0_i32_0 = arith.constant 0 : i32
    %c0_i32_1 = arith.constant 0 : i32
    return %c0_i32, %c0_i32_0 : i32, i32
  }
  func.func @transform_6(%arg0: i32) -> (i32, i32) {
    %c0_i32 = arith.constant 0 : i32
    %c0_i32_0 = arith.constant 0 : i32
    %c0_i32_1 = arith.constant 0 : i32
    return %c0_i32, %c0_i32_0 : i32, i32
  }
  func.func @transform_7(%arg0: i32) -> (i32, i32) {
    %c0_i32 = arith.constant 0 : i32
    %c0_i32_0 = arith.constant 0 : i32
    %c0_i32_1 = arith.constant 0 : i32
    return %c0_i32, %c0_i32_0 : i32, i32
  }
  func.func @transform_8(%arg0: i32) -> (i32, i32) {
    %c0_i32 = arith.constant 0 : i32
    %c0_i32_0 = arith.constant 0 : i32
    %c0_i32_1 = arith.constant 0 : i32
    return %c0_i32, %c0_i32_0 : i32, i32
  }
  func.func @transform_9(%arg0: i32) -> (i32, i32) {
    %c0_i32 = arith.constant 0 : i32
    %c0_i32_0 = arith.constant 0 : i32
    %c0_i32_1 = arith.constant 0 : i32
    return %c0_i32, %c0_i32_0 : i32, i32
  }
  func.func @transform_10(%arg0: i32) -> (i32, i32, i32) {
    %c0_i32 = arith.constant 0 : i32
    %c0_i32_0 = arith.constant 0 : i32
    %c0_i32_1 = arith.constant 0 : i32
    return %arg0, %c0_i32, %c0_i32_0 : i32, i32, i32
  }
}

</mosaic_0001>

<bundles_post_ra>
// kernel: tpu_custom_call.1
= control target key start
LH: loop header
LB: loop body
LE: loop exit
PB: predicated region body
PF: predicated region fallthrough
CT: control target
= control target key end

     0   :  { %s2058_s0 = inlined_call_operand.hbm [shape: f32[2,16,32], index: 0, kind: input, shape index: {}]   ;;  %s2059_s1 = inlined_call_operand.hbm [shape: f32[2,8,32], index: 1, kind: input, shape index: {}]   ;;  %s2060_s2 = inlined_call_operand.vmem [shape: f32[1,32], index: 2, kind: input, shape index: {}]   ;;  %s2061_s3 = inlined_call_operand.vmem [shape: f32[1,32], index: 3, kind: input, shape index: {}]   ;;  %s2062_s4 = inlined_call_operand.vmem [shape: f32[1,32], index: 4, kind: input, shape index: {}]   ;;  %s2063_s5 = inlined_call_operand.vmem [shape: f32[1,32], index: 5, kind: input, shape index: {}]   ;;  %s2064_s6 = inlined_call_operand.hbm [shape: bf16[32,32], index: 6, kind: input, shape index: {}]   ;;  %s2065_s7 = inlined_call_operand.hbm [shape: bf16[32,32], index: 7, kind: input, shape index: {}]   ;;  %s2066_s8 = inlined_call_operand.hbm [shape: bf16[32,32], index: 8, kind: input, shape index: {}]   ;;  %s2067_s9 = inlined_call_operand.hbm [shape: bf16[32,32], index: 9, kind: input, shape index: {}]   ;;  %s2068_s10 = inlined_call_operand.hbm [shape: f32[2,8,32], index: 10, kind: output, shape index: {}]  }
   0x1   :  { %2074 = sst [smem:[#allocation25_spill]] %s2058_s0 }
   0x2   :  { %2075 = sst [smem:[#allocation26_spill]] %s2064_s6 }
   0x3   :  { %2076 = sst [smem:[#allocation27_spill]] %s2065_s7 }
   0x4   :  { %2077 = sst [smem:[#allocation28_spill]] %s2066_s8 }
   0x5   :  { %2078 = sst [smem:[#allocation29_spill]] %s2067_s9 }
   0x6   :  { %15 = vsyncpa [#allocation3], 0 }
   0x7   :  { %17 = vsyncpa [#allocation3 + $0x1], 0 }
   0x8   :  { %18 = vsyncpa [#allocation6], 0 }
   0x9   :  { %20 = vsyncpa [#allocation6 + $0x1], 0 }
   0xa   :  { %21 = vsyncpa [#allocation9], 0 }
   0xb   :  { %22 = vsyncpa [#allocation12], 0 }
   0xc   :  { %23 = vsyncpa [#allocation4], 0 }
   0xd   :  { %25 = vsyncpa [#allocation4 + $0x1], 0  ;;  %s1804_s13 = smov 0   ;;  %s1806_s14 = smov 0  }
   0xe   :  { %s1808_s15 = smov 0   ;;  %s1810_s16 = smov 0  }
   0xf LB: > { %2079 = sst [smem:[#allocation20_spill]] %s1726_s13  ;;  %s1825_s17 = sadd.s32 4294967295, %s1738_s16   ;;  %s1738_s16 = sphi %s1810_s16, %s2098_s16   ;;  %s1734_s15 = sphi %s1808_s15, %s2100_s15   ;;  %s1730_s14 = sphi %s1806_s14, %s2102_s14   ;;  %s1726_s13 = sphi %s1804_s13, %s2101_s13  }
  0x10   : > { %2080 = sst [smem:[#allocation21_spill]] %s1734_s15  ;;  %s1270_s18 = sadd.s32 4294967294, %s1738_s16  }
  0x11   : > { %p51_p0 = scmp.ne.s32.totalorder %s1730_s14, %s1726_s13  ;;  %p52_p1 = scmp.eq.s32.totalorder %s1825_s17, 0 }
  0x12   : > { %p269_p2 = scmp.eq.s32.totalorder %s1825_s17, 1  ;;  %p275_p3 = scmp.eq.s32.totalorder %s1270_s18, 1 }
  0x13   : > { %p1834_p4 = por %p52_p1, %p51_p0  ;;  %p1271_p5 = scmp.ge.s32.totalorder %s1738_s16, 1 }
  0x14   : > { %p1839_p6 = por %p275_p3, %p51_p0  ;;  %p282_p7 = scmp.lt.s32.totalorder %s1738_s16, 3 }
  0x15   : > { %s2084_s6 = sld [smem:[#allocation26_spill]]  ;;  %s1740_s25 = smov [#allocation7]  }
  0x16   : > { %s2082_s20 = scalar_select %p1839_p6, 1, 0 }
  0x17   : > { %p1847_p8 = pnand %p1271_p5, %p282_p7  ;;  %s307_s26 = sshll.u32 %s1740_s25, 4  ;;  %s308_s26 = int_to_ptr.vmem [resolvable:$true] %s307_s26 }
  0x18   : > { %2083 = sst [smem:[#allocation22_spill]] %s2082_s20  ;;  %s1741_s11 = smov 64  }
  0x19   : > { %p1372_p9 = pneg %p1847_p8  ;;  %s2087_s7 = sld [smem:[#allocation27_spill]] }
  0x1a   : > { %s1742_s12 = smov 4   ;;  %s1743_s18 = smov [#allocation8]  }
  0x1b   : > { %s305_s23 = sshll.u32 %s2084_s6, 4  ;;  %p1855_p10 = pnand %p1372_p9, %p52_p1  ;;  %s306_s23 = int_to_ptr.hbm [resolvable:$true] %s305_s23 }
  0x1c   : > { %s321_s21 = sshll.u32 %s1743_s18, 4  ;;  %s2088_s8 = sld [smem:[#allocation28_spill]]  ;;  %s322_s21 = int_to_ptr.vmem [resolvable:$true] %s321_s21 }
  0x1d   : > { %1375 = dma.hbm_to_vmem [thread:$0]  (!%p1855_p10), %s306_s23, 256, %s308_s26, [#allocation6], %s1741_s11, %s1741_s11, %s1742_s12  }
  0x1e   : > { %s2089_s9 = sld [smem:[#allocation29_spill]]  ;;  %s1744_s26 = smov [#allocation10]  }
  0x1f   : > { %s319_s30 = sshll.u32 %s2087_s7, 4  ;;  %s335_s18 = sshll.u32 %s1744_s26, 4  ;;  %s320_s30 = int_to_ptr.hbm [resolvable:$true] %s319_s30  ;;  %s336_s18 = int_to_ptr.vmem [resolvable:$true] %s335_s18 }
  0x20   : > { %1378 = dma.hbm_to_vmem [thread:$0]  (!%p1855_p10), %s320_s30, 256, %s322_s21, [#allocation9], %s1741_s11, %s1741_s11, %s1742_s12  }
  0x21   : > { %s1745_s22 = smov [#allocation11]   ;;  %s1878_s30 = sadd.s32 1, %s1738_s16  }
  0x22   : > { %s333_s6 = sshll.u32 %s2088_s8, 4  ;;  %s349_s25 = sshll.u32 %s1745_s22, 4  ;;  %s334_s6 = int_to_ptr.hbm [resolvable:$true] %s333_s6  ;;  %s350_s25 = int_to_ptr.vmem [resolvable:$true] %s349_s25 }
  0x23   : > { %1381 = dma.hbm_to_vmem [thread:$0]  (!%p1855_p10), %s334_s6, 256, %s336_s18, [#allocation9], %s1741_s11, %s1741_s11, %s1742_s12  }
  0x24   : > { %s347_s23 = sshll.u32 %s2089_s9, 4  ;;  %2090 = sst [smem:[#allocation23_spill]] %s1878_s30  ;;  %s348_s23 = int_to_ptr.hbm [resolvable:$true] %s347_s23 }
  0x25   : > { %1384 = dma.hbm_to_vmem [thread:$0]  (!%p1855_p10), %s348_s23, 256, %s350_s25, [#allocation12], %s1741_s11, %s1741_s11, %s1742_s12  }
  0x26   : > { %s38_s21 = sadd.s32 1, %s1734_s15  ;;  %s35_s28 = ssub.s32 %s1738_s16, %s1878_s30 }
  0x27   : > { %p45_p12 = scmp.ne.s32.totalorder %s1734_s15, %s1730_s14  ;;  %p36_p13 = scmp.eq.s32.totalorder %s35_s28, 0 }
  0x28   : > { %p46_p0 = scmp.eq.s32.totalorder %s1738_s16, 0  ;;  %p1400_p5 = scmp.lt.s32.totalorder %s1738_s16, 2 }
  0x29   : > { %p1888_p3 = por %p269_p2, %p45_p12  ;;  %s1897_s27 = sand.u32 1, %s1734_s15  }
  0x2a   : > { %s1894_s6 = scalar_select %p36_p13, %s1734_s15, %s38_s21  }
  0x2b   : > { %p47_p7 = por %p46_p0, %p45_p12  ;;  %s1277_s11 = sshll.u32 %s1897_s27, 4 }
  0x2c   : > { %2092 = sst [smem:[#allocation24_spill]] %s1894_s6  ;;  %s1341_s12 = sshll.u32 %s1738_s16, 4 }
  0x2d   : > { %s2093_s0 = sld [smem:[#allocation25_spill]]  ;;  %s367_s22 = scalar_lea.vmem [#allocation2], %s1277_s11 }
  0x2e   : > { %s375_s25 = sshll.u32 %s367_s22, 4  ;;  %p1904_p2 = pnand %p1400_p5, %p47_p7  ;;  %s376_s25 = int_to_ptr.vmem [resolvable:$true] %s375_s25 }
  0x2f   : > { %s385_s21 = sand.u32 1, %s1738_s16   ;;  %s364_s8 = scalar_lea.sflag [#allocation3], %s1897_s27 }
  0x30   : > { %p1600_p10 = pneg %p1904_p2 }
  0x33   : > { %s372_s18 = scalar_lea.hbm %s2093_s0, %s1341_s12  ;;  %s1603_s23 = scalar_lea.hbm %s2093_s0, 32 }
  0x34   : > { %s373_s28 = sshll.u32 %s372_s18, 4  ;;  %s374_s28 = int_to_ptr.hbm [resolvable:$true] %s373_s28 }
  0x35   : > { %s1596_s9 = sshra.s32 %s374_s28, 4  ;;  %s1597_s9 = int_to_ptr.hbm [resolvable:$true] %s1596_s9 }
  0x36   : > { %s1598_s6 = scalar_lea.hbm %s1597_s9, 16  ;;  %p1604_p0 = scmp.lt.s32.totalorder %s1597_s9, %s2093_s0 }
  0x37   : > { %p1599_p9 = scmp.ne.s32.totalorder %s1597_s9, %s1598_s6  ;;  %p1605_p5 = scmp.lt.s32.totalorder %s1603_s23, %s1598_s6 }
  0x39   : > { %p1601_p12 = pnand %p1600_p10, %p1599_p9  ;;  %p1606_p7 = por %p1605_p5, %p1604_p0 }
  0x3b   : > { %p1602_p13 = pneg %p1601_p12 }
  0x3d   : > { %p1607_p11 = pnand %p1606_p7, %p1602_p13 }
  0x3f   : > { %1610 = shalt.err (!%p1607_p11)
}
  0x40   : > { %s1746_s22 = smov 128   ;;  %s1747_s15 = smov 8  }
  0x41   : > { %1388 = dma.hbm_to_vmem [thread:$0]  (!%p1904_p2), %s374_s28, 256, %s376_s25, %s364_s8, %s1746_s22, %s1746_s22, %s1747_s15  }
  0x42   : > { %s1280_s30 = sshll.u32 %s1897_s27, 3  ;;  %s1281_s20 = sshll.u32 %s1738_s16, 3 }
  0x43   : > { %s393_s13 = scalar_lea.hbm %s2059_s1, %s1281_s20  ;;  %s389_s26 = scalar_lea.vmem [#allocation5], %s1280_s30 }
  0x44   : > { %s397_s9 = sshll.u32 %s389_s26, 4  ;;  %s395_s6 = sshll.u32 %s393_s13, 4  ;;  %s398_s9 = int_to_ptr.vmem [resolvable:$true] %s397_s9  ;;  %s396_s6 = int_to_ptr.hbm [resolvable:$true] %s395_s6 }
  0x45   : > { %s386_s23 = scalar_lea.sflag [#allocation6], %s385_s21  ;;  %s1626_s18 = sshra.s32 %s396_s6, 4  ;;  %s1627_s18 = int_to_ptr.hbm [resolvable:$true] %s1626_s18 }
  0x46   : > { %s1628_s0 = scalar_lea.hbm %s1627_s18, 8  ;;  %s1633_s27 = scalar_lea.hbm %s2059_s1, 16 }
  0x47   : > { %p1629_p11 = scmp.ne.s32.totalorder %s1627_s18, %s1628_s0  ;;  %p1634_p13 = scmp.lt.s32.totalorder %s1627_s18, %s2059_s1 }
  0x48   : > { %p1635_p0 = scmp.lt.s32.totalorder %s1633_s27, %s1628_s0 }
  0x49   : > { %p1631_p9 = pnand %p1629_p11, %p1600_p10 }
  0x4a   : > { %p1636_p5 = por %p1635_p0, %p1634_p13 }
  0x4b   : > { %p1632_p12 = pneg %p1631_p9 }
  0x4d   : > { %p1637_p7 = pnand %p1636_p5, %p1632_p12 }
  0x4f   : > { %1640 = shalt.err (!%p1637_p7)
}
  0x50   : > { %1391 = dma.hbm_to_vmem [thread:$0]  (!%p1904_p2), %s396_s6, 128, %s398_s9, %s386_s23  }
  0x51   : > { %406 = sbr.rel (%p1847_p8) target bundleno = 1515 (0x5eb), region = 60  ;;  %s1942_s13 = sand.u32 (!%p1847_p8), 1, %s1730_s14  }
  0x52   : > { %s1283_s30 = sshll.u32 (!%p1847_p8), %s1942_s13, 4  ;;  %s409_s28 = scalar_lea.sflag (!%p1847_p8), [#allocation3], %s1942_s13 }
  0x53   : > { %s412_s21 = scalar_lea.vmem (!%p1847_p8), [#allocation2], %s1283_s30 }
  0x56   : > { %1701 = dma.done.wait (%p1834_p4), %s409_s28, 256  }
  0x57   : > { %1703 = vsyncadd (%p1834_p4), %s409_s28, 4294967040  ;;  %s418_s0 = sand.u32 1, %s1825_s17   ;;  %s1284_s7 = sshll.u32 %s1942_s13, 3 }
  0x58   : > { %s419_s24 = scalar_lea.sflag [#allocation6], %s418_s0  ;;  %s422_s22 = scalar_lea.vmem [#allocation5], %s1284_s7 }
  0x59   : > { %1705 = dma.done.wait (%p1834_p4), %s419_s24, 128  }
  0x5a   : > { %1707 = vsyncadd (%p1834_p4), %s419_s24, 4294967168 }
  0x5b   : > { %1709 = dma.done.wait (%p52_p1), [#allocation6], 256  }
  0x5c   : > { %1711 = vsyncadd (%p52_p1), [#allocation6], 4294967040 }
  0x5d   : > { %1713 = dma.done.wait (%p52_p1), [#allocation9], 512  }
  0x5e   : > { %1715 = vsyncadd (%p52_p1), [#allocation9], 4294966784 }
  0x5f   : > { %1717 = dma.done.wait (%p52_p1), [#allocation12], 256  }
  0x60   : > { %1719 = vsyncadd (%p52_p1), [#allocation12], 4294967040  ;;  %vm490_vm0 = vcmask 261120   ;;  %v552_v0 = vld [vmem:[%s422_s22] sm:$0xff]  ;;  %v487_v1 = vld [vmem:[%s412_s21 + $0x8] sm:$0xff]  ;;  %v1748_v6 = vmov 32.0  }
  0x61   : > { %v555_v2 = vsel %vm490_vm0, %v552_v0, 0.0  ;;  %v494_v3 = vsel %vm490_vm0, %v487_v1, 0.0  ;;  %v486_v4 = vld [vmem:[%s412_s21] sm:$0xff]  ;;  %1452 = vrcp.f32 %v1748_v6  ;;  %vm858_vm11 = vcmask 1043456   ;;  %s1338_s8 = sshll.u32 %s1825_s17, 3  ;;  %s484_s20 = scalar_lea.vmem [#allocation13], %s1284_s7 }
  0x62   : > { %556 = vadd.xlane.f32.xlu0 %v555_v2  ;;  %495 = vadd.xlane.f32.xlu1 %v494_v3  ;;  %v491_v5 = vsel %vm490_vm0, %v486_v4, 0.0  ;;  %v1448_v45 = vld [vmem:[%s2062_s4] ss:$0 sm:$0xff]  ;;  %v1342_v63 = vld [vmem:[#allocation7] sm:$0xff]  ;;  %vm854_vm12 = vcmask 64512   ;;  %vm932_vm13 = vcmask 195584   ;;  %s1134_s25 = scalar_lea.hbm %s2068_s10, %s1338_s8 }
  0x63   : > { %v1449_v49 = vld [vmem:[%s2063_s5] ss:$0 sm:$0xff]  ;;  %s1136_s30 = sshll.u32 %s484_s20, 4  ;;  %s1138_s28 = sshll.u32 %s1134_s25, 4  ;;  %s1137_s30 = int_to_ptr.vmem [resolvable:$true] %s1136_s30  ;;  %s1139_s28 = int_to_ptr.hbm [resolvable:$true] %s1138_s28 }
  0x64   : > { %v1451_v6 = vld [vmem:[%s2061_s3] ss:$0 sm:$0xff]  ;;  %s1124_s21 = scalar_lea.sflag [#allocation4], %s1942_s13  ;;  %s1670_s0 = sshra.s32 %s1139_s28, 4  ;;  %s1671_s0 = int_to_ptr.hbm [resolvable:$true] %s1670_s0 }
  0x65   : > { %s1672_s24 = scalar_lea.hbm %s1671_s0, 8  ;;  %s1676_s19 = scalar_lea.hbm %s2068_s10, 16 }
  0x66   : > { %p1673_p1 = scmp.ne.s32.totalorder %s1671_s0, %s1672_s24  ;;  %p1677_p2 = scmp.lt.s32.totalorder %s1671_s0, %s2068_s10 }
  0x67   : > { %v1453_v7 = vpop.eup %1452  ;;  %p1678_p10 = scmp.lt.s32.totalorder %s1676_s19, %s1672_s24 }
  0x68   : > { %v498_v8 = vmul.f32 32.0, %v1453_v7  ;;  %vm502_vm1 = vweird.f32 %v1453_v7  ;;  %p1674_p4 = pnand %p1673_p1, %p1888_p3 }
  0x69   : > { %p1679_p11 = por %p1678_p10, %p1677_p2 }
  0x6a   : > { %492 = vadd.xlane.f32.xlu0 %v491_v5  ;;  %v499_v9 = vsub.f32 1.0, %v498_v8  ;;  %p1675_p8 = pneg %p1674_p4 }
  0x6c   : > { %v500_v10 = vmul.f32 %v1453_v7, %v499_v9  ;;  %p1680_p9 = pnand %p1679_p11, %p1675_p8 }
  0x6e   : > { %v501_v11 = vadd.f32 %v1453_v7, %v500_v10 }
  0x70   : > { %v503_v12 = vsel %vm502_vm1, %v1453_v7, %v501_v11 }
  0xd5   : > { %v557_v13 = vpop.xlane.xlu0 %556  ;;  %v496_v17 = vpop.xlane.xlu1 %495 }
  0xd6   : > { %v558_v14 = vmul.f32 %v557_v13, %v503_v12  ;;  %v505_v21 = vmul.f32 %v503_v12, %v496_v17  ;;  %v1344_v13 = vld [vmem:[#allocation8] sm:$0xff] }
  0xd8   : > { %v559_v15 = vsub.f32 %v552_v0, %v558_v14  ;;  %v1974_v23 = vsub.f32 %v487_v1, %v505_v21  ;;  %v1450_v1 = vld [vmem:[%s2060_s2] ss:$0 sm:$0xff]  ;;  %v1345_v14 = vld [vmem:[#allocation8 + $0x8] sm:$0xff] }
  0xda   : > { %v560_v16 = vmul.f32 %v559_v15, %v559_v15  ;;  %v509_v26 = vmul.f32 %v1974_v23, %v1974_v23 }
  0xdc   : > { %v561_v18 = vsel %vm490_vm0, %v560_v16, 0.0  ;;  %v513_v27 = vsel %vm490_vm0, %v509_v26, 0.0 }
  0xdd   : > { %562 = vadd.xlane.f32.xlu1 %v561_v18  ;;  %v493_v19 = vpop.xlane.xlu0 %492 }
  0xde   : > { %v504_v20 = vmul.f32 %v503_v12, %v493_v19 }
  0xe0   : > { %v506_v22 = vsub.f32 %v486_v4, %v504_v20 }
  0xe2   : > { %v508_v24 = vmul.f32 %v506_v22, %v506_v22 }
  0xe4   : > { %v510_v25 = vsel %vm490_vm0, %v508_v24, 0.0 }
  0xe5   : > { %511 = vadd.xlane.f32.xlu2 %v510_v25 }
  0xed   : > { %514 = vadd.xlane.f32.xlu2 %v513_v27 }
 0x150   : > { %v563_v28 = vpop.xlane.xlu1 %562 }
 0x151   : > { %v564_v29 = vmul.f32 %v563_v28, %v503_v12 }
 0x153   : > { %v565_v30 = vadd.f32 1e-05, %v564_v29 }
 0x155   : > { %1454 = vrsqrt.f32 %v565_v30  ;;  %vm572_vm3 = vweird.f32 %v565_v30 }
 0x158   : > { %v512_v31 = vpop.xlane.xlu2 %511 }
 0x159   : > { %v516_v32 = vmul.f32 %v512_v31, %v503_v12 }
 0x15b   : > { %v1455_v33 = vpop.eup %1454  ;;  %v518_v34 = vadd.f32 1e-05, %v516_v32 }
 0x15c   : > { %v567_v35 = vmul.f32 %v1455_v33, %v565_v30  ;;  %vm573_vm2 = vweird.f32 %v1455_v33 }
 0x15d   : > { %1456 = vrsqrt.f32 %v518_v34  ;;  %vm574_vm4 = vmor %vm572_vm3, %vm573_vm2  ;;  %vm526_vm5 = vweird.f32 %v518_v34 }
 0x15e   : > { %v568_v36 = vmul.f32 %v1455_v33, %v567_v35 }
 0x160   : > { %v569_v37 = vmul.f32 0.5, %v568_v36  ;;  %v515_v38 = vpop.xlane.xlu2 %514 }
 0x161   : > { %v517_v39 = vmul.f32 %v515_v38, %v503_v12  ;;  %v1343_v12 = vld [vmem:[#allocation7 + $0x8] sm:$0xff] }
 0x162   : > { %v570_v40 = vsub.f32 1.5, %v569_v37 }
 0x163   : > { %v1457_v41 = vpop.eup %1456  ;;  %v519_v42 = vadd.f32 1e-05, %v517_v39 }
 0x164   : > { %v571_v43 = vmul.f32 %v1455_v33, %v570_v40  ;;  %v521_v44 = vmul.f32 %v1457_v41, %v518_v34  ;;  %vm527_vm6 = vweird.f32 %v1457_v41 }
 0x165   : > { %1458 = vrsqrt.f32 %v519_v42  ;;  %vm528_vm7 = vmor %vm526_vm5, %vm527_vm6  ;;  %vm536_vm8 = vweird.f32 %v519_v42 }
 0x166   : > { %v575_v46 = vsel %vm574_vm4, %v1455_v33, %v571_v43  ;;  %v522_v47 = vmul.f32 %v1457_v41, %v521_v44 }
 0x167   : > { %v576_v48 = vmul.f32 %v575_v46, %v559_v15 }
 0x168   : > { %v523_v50 = vmul.f32 0.5, %v522_v47 }
 0x169   : > { %v580_v51 = vmul.f32 %v1448_v45, %v576_v48 }
 0x16a   : > { %v524_v52 = vsub.f32 1.5, %v523_v50 }
 0x16b   : > { %v1459_v53 = vpop.eup %1458  ;;  %v584_v54 = vadd.f32 %v1449_v49, %v580_v51 }
 0x16c   : > { %v525_v55 = vmul.f32 %v1457_v41, %v524_v52  ;;  %v531_v56 = vmul.f32 %v1459_v53, %v519_v42  ;;  %vm537_vm9 = vweird.f32 %v1459_v53 }
 0x16d   : > { %v585_v57 = vpack.c.bf16 %v584_v54, %v584_v54  ;;  %vm538_vm10 = vmor %vm536_vm8, %vm537_vm9 }
 0x16e   : > { %v532_v58 = vmul.f32 %v1459_v53, %v531_v56  ;;  %v529_v60 = vsel %vm528_vm7, %v1457_v41, %v525_v55  ;;  %v1346_v55 = vld [vmem:[#allocation10] sm:$0xff] }
 0x16f   : > { %v608_v59 = vsel %vm490_vm0, %v585_v57, 0  ;;  %v540_v0 = vmul.f32 %v529_v60, %v506_v22 }
 0x170   : > { %v533_v61 = vmul.f32 0.5, %v532_v58  ;;  %617 = vmatpush.bf16.xpose.msra.mxu0 %v608_v59  ;;  %662 = vmatpush.bf16.xpose.msra.mxu1 %v608_v59 }
 0x171   : > { %701 = vmatpush.bf16.xpose.msra.mxu2 %v608_v59  ;;  %v545_v5 = vmul.f32 %v1450_v1, %v540_v0  ;;  %v1347_v59 = vld [vmem:[#allocation10 + $0x8] sm:$0xff] }
 0x172   : > { %v534_v62 = vsub.f32 1.5, %v533_v61 }
 0x173   : > { %v550_v8 = vadd.f32 %v1451_v6, %v545_v5 }
 0x174   : > { %v535_v2 = vmul.f32 %v1459_v53, %v534_v62 }
 0x176   : > { %v539_v3 = vsel %vm538_vm10, %v1459_v53, %v535_v2 }
 0x177   : > { %1298 = vmatmul.msk.bf16.vlgmr.msra.gmra.mxu0 %vm490_vm0, %v1342_v63  ;;  %v541_v4 = vmul.f32 %v539_v3, %v1974_v23 }
 0x179   : > { %v546_v7 = vmul.f32 %v1450_v1, %v541_v4 }
 0x17b   : > { %v551_v9 = vadd.f32 %v1451_v6, %v546_v7 }
 0x17d   : > { %v586_v10 = vpack.c.bf16 %v551_v9, %v550_v8 }
 0x17f   : > { %v654_v11 = vsel %vm490_vm0, %v586_v10, 0 }
 0x180   : > { %663 = vmatpush.bf16.xpose.msra.mxu1 %v654_v11  ;;  %702 = vmatpush.bf16.xpose.msra.mxu2 %v654_v11 }
 0x187   : > { %1299 = vmatmul.msk.bf16.gmra.mxu0 %vm490_vm0, %v1343_v12  ;;  %1308 = vmatmul.msk.bf16.vlgmr.msra.gmra.mxu1 %vm490_vm0, %v1344_v13 }
 0x188   : > { %1318 = vmatmul.msk.bf16.vlgmr.msra.gmra.mxu2 %vm490_vm0, %v1346_v55 }
 0x197   : > { %1309 = vmatmul.msk.bf16.gmra.mxu1 %vm490_vm0, %v1345_v14 }
 0x198   : > { %1319 = vmatmul.msk.bf16.gmra.mxu2 %vm490_vm0, %v1347_v59 }
 0x1f4   : > { %v619_v15 = vpop.f32.mrf.mxu0 }
 0x1f5   : > { %v629_v16 = vmul.f32 0.35355338, %v619_v15 }
 0x1f7   : > { %714 = vxpose.xlu0.b32.start.end [1/1] (short) (narrow) %v629_v16, 8 }
 0x1fc   : > { %v621_v17 = vpop.f32.mrf.mxu0 }
 0x1fd   : > { %v630_v18 = vmul.f32 0.35355338, %v621_v17 }
 0x1ff   : > { %746 = vxpose.xlu1.b32.start.end [1/1] (short) (narrow) %v630_v18, 8 }
 0x204   : > { %v624_v19 = vpop.f32.mrf.mxu0  ;;  %v665_v23 = vpop.f32.mrf.mxu1 }
 0x205   : > { %v631_v20 = vmul.f32 0.35355338, %v624_v19  ;;  %v846_v24 = vpack.c.bf16 %v665_v23, %v665_v23 }
 0x207   : > { %778 = vxpose.xlu2.b32.start.end [1/1] (short) (narrow) %v631_v20, 8  ;;  %v860_v25 = vsel %vm858_vm11, %v846_v24, 0 }
 0x208   : > { %869 = vmatpush.bf16.msra.mxu3 %v860_v25 }
 0x20b   : > { %v704_v18 = vpop.f32.mrf.mxu2 }
 0x20c   : > { %v626_v21 = vpop.f32.mrf.mxu0  ;;  %v667_v26 = vpop.f32.mrf.mxu1  ;;  %v850_v20 = vpack.c.bf16 %v704_v18, %v704_v18 }
 0x20d   : > { %v632_v22 = vmul.f32 0.35355338, %v626_v21  ;;  %v847_v27 = vpack.c.bf16 %v667_v26, %v667_v26 }
 0x20f   : > { %810 = vxpose.xlu0.b32.start.end [1/1] (short) (narrow) %v632_v22, 8  ;;  %v879_v28 = vsel %vm858_vm11, %v847_v27, 0 }
 0x210   : > { %888 = vmatpush.bf16.msrb.mxu3 %v879_v28 }
 0x213   : > { %v706_v25 = vpop.f32.mrf.mxu2 }
 0x214   : > { %v670_v29 = vpop.f32.mrf.mxu1  ;;  %v851_v27 = vpack.c.bf16 %v706_v25, %v706_v25 }
 0x215   : > { %v848_v32 = vpack.c.bf16 %v670_v29, %v670_v29 }
 0x217   : > { %v898_v36 = vsel %vm858_vm11, %v848_v32, 0 }
 0x21c   : > { %v672_v30 = vpop.f32.mrf.mxu1 }
 0x21d   : > { %v849_v31 = vpack.c.bf16 %v672_v30, %v672_v30 }
 0x21f   : > { %v917_v33 = vsel %vm858_vm11, %v849_v31, 0 }
 0x220   : > { %926 = vmatpush.bf16.msrb.mxu0 %v917_v33  ;;  %v709_v33 = vpop.f32.mrf.mxu2 }
 0x29b   : > { %v730_v34 = vpop.trf.xlu0 }
 0x29c   : > { %v842_v35 = vpack.c.bf16 %v730_v34, %v730_v34 }
 0x29e   : > { %1320 = vmatmul.msk.bf16.vlgmr.msra.gmra.mxu3 %vm854_vm12, %v842_v35  ;;  %v852_v35 = vpack.c.bf16 %v709_v33, %v709_v33 }
 0x29f   : > { %907 = vmatpush.bf16.msra.mxu3 %v898_v36 }
 0x2a0   : > { %v794_v41 = vpop.trf.xlu2 }
 0x2a1   : > { %v844_v42 = vpack.c.bf16 %v794_v41, %v794_v41 }
 0x2a3   : > { %v762_v37 = vpop.trf.xlu1 }
 0x2a4   : > { %v843_v38 = vpack.c.bf16 %v762_v37, %v762_v37 }
 0x2ae   : > { %1321 = vmatmul.msk.bf16.vlgmr.msrb.gmra.mxu3 %vm854_vm12, %v843_v38 }
 0x2b3   : > { %v826_v39 = vpop.trf.xlu0 }
 0x2b4   : > { %v845_v40 = vpack.c.bf16 %v826_v39, %v826_v39  ;;  %v711_v39 = vpop.f32.mrf.mxu2 }
 0x2b6   : > { %1323 = vmatmul.msk.bf16.vlgmr.msrb.gmra.mxu0 %vm854_vm12, %v845_v40  ;;  %v853_v40 = vpack.c.bf16 %v711_v39, %v711_v39 }
 0x2be   : > { %1322 = vmatmul.msk.bf16.vlgmr.msra.gmra.mxu3 %vm854_vm12, %v844_v42 }
 0x321   : > { %v871_v43 = vpop.f32.mrf.mxu3 }
 0x322   : > { %v933_v44 = vsel %vm932_vm13, %v871_v43, -inf }
 0x323   : > { %934 = vmax.xlane.f32.xlu0 %v933_v44  ;;  %v1348_v44 = vld [vmem:[#allocation11] sm:$0xff] }
 0x329   : > { %v873_v45 = vpop.f32.mrf.mxu3 }
 0x331   : > { %v890_v46 = vpop.f32.mrf.mxu3 }
 0x332   : > { %v936_v47 = vsel %vm932_vm13, %v890_v46, -inf }
 0x333   : > { %937 = vmax.xlane.f32.xlu2 %v936_v47  ;;  %v928_v48 = vpop.f32.mrf.mxu0 }
 0x334   : > { %v942_v53 = vsel %vm932_vm13, %v928_v48, -inf }
 0x339   : > { %v892_v49 = vpop.f32.mrf.mxu3 }
 0x33b   : > { %v930_v50 = vpop.f32.mrf.mxu0 }
 0x341   : > { %v909_v51 = vpop.f32.mrf.mxu3 }
 0x342   : > { %v939_v52 = vsel %vm932_vm13, %v909_v51, -inf }
 0x343   : > { %940 = vmax.xlane.f32.xlu1 %v939_v52 }
 0x349   : > { %v911_v54 = vpop.f32.mrf.mxu3 }
 0x34b   : > { %943 = vmax.xlane.f32.xlu1 %v942_v53 }
 0x396   : > { %v935_v56 = vpop.xlane.xlu0 %934 }
 0x397   : > { %v945_v57 = vsub.f32 %v871_v43, %v935_v56  ;;  %v1349_v43 = vld [vmem:[#allocation11 + $0x8] sm:$0xff] }
 0x399   : > { %v949_v58 = vmul.f32 1.442695, %v945_v57 }
 0x39b   : > { %1460 = vpow2.f32 %v949_v58 }
 0x3a1   : > { %v1461_v60 = vpop.eup %1460 }
 0x3a2   : > { %v957_v61 = vsel %vm932_vm13, %v1461_v60, 0.0 }
 0x3a3   : > { %958 = vadd.xlane.f32.xlu0 %v957_v61 }
 0x3a6   : > { %v938_v62 = vpop.xlane.xlu2 %937 }
 0x3a7   : > { %v946_v63 = vsub.f32 %v890_v46, %v938_v62 }
 0x3a9   : > { %v951_v0 = vmul.f32 1.442695, %v946_v63 }
 0x3ab   : > { %1462 = vpow2.f32 %v951_v0 }
 0x3b1   : > { %v1463_v1 = vpop.eup %1462 }
 0x3b2   : > { %v960_v2 = vsel %vm932_vm13, %v1463_v1, 0.0 }
 0x3b3   : > { %961 = vadd.xlane.f32.xlu2 %v960_v2 }
 0x3b6   : > { %v941_v3 = vpop.xlane.xlu1 %940 }
 0x3b7   : > { %v947_v4 = vsub.f32 %v909_v51, %v941_v3 }
 0x3b9   : > { %v953_v5 = vmul.f32 1.442695, %v947_v4 }
 0x3bb   : > { %1464 = vpow2.f32 %v953_v5 }
 0x3be   : > { %v944_v6 = vpop.xlane.xlu1 %943 }
 0x3bf   : > { %v948_v7 = vsub.f32 %v928_v48, %v944_v6 }
 0x3c1   : > { %v1465_v8 = vpop.eup %1464  ;;  %v955_v9 = vmul.f32 1.442695, %v948_v7 }
 0x3c2   : > { %v963_v10 = vsel %vm932_vm13, %v1465_v8, 0.0 }
 0x3c3   : > { %1466 = vpow2.f32 %v955_v9  ;;  %964 = vadd.xlane.f32.xlu1 %v963_v10 }
 0x3c9   : > { %v1467_v11 = vpop.eup %1466 }
 0x3ca   : > { %v966_v12 = vsel %vm932_vm13, %v1467_v11, 0.0 }
 0x3cb   : > { %967 = vadd.xlane.f32.xlu2 %v966_v12 }
 0x416   : > { %v959_v13 = vpop.xlane.xlu0 %958 }
 0x417   : > { %1468 = vrcp.f32 %v959_v13 }
 0x41d   : > { %v1469_v14 = vpop.eup %1468 }
 0x41e   : > { %v973_v15 = vmul.f32 %v1469_v14, %v1461_v60 }
 0x420   : > { %v977_v16 = vpack.c.bf16 %v973_v15, %v973_v15 }
 0x422   : > { %v985_v17 = vsel %vm932_vm13, %v977_v16, 0 }
 0x423   : > { %994 = vmatpush.bf16.xpose.msrb.mxu1 %v985_v17 }
 0x426   : > { %v962_v19 = vpop.xlane.xlu2 %961 }
 0x427   : > { %1470 = vrcp.f32 %v962_v19 }
 0x42a   : > { %1324 = vmatmul.msk.bf16.vlgmr.msrb.gmra.mxu1 %vm932_vm13, %v850_v20 }
 0x42b   : > { %1115 = vmatpush.bf16.msra.mxu1 %v1349_v43 }
 0x42d   : > { %v1471_v21 = vpop.eup %1470 }
 0x42e   : > { %v974_v22 = vmul.f32 %v1471_v21, %v1463_v1 }
 0x42f   : > { %1116 = vmatpush.bf16.msra.mxu1 %v1348_v44 }
 0x430   : > { %v978_v23 = vpack.c.bf16 %v974_v22, %v974_v22 }
 0x432   : > { %v1004_v24 = vsel %vm932_vm13, %v978_v23, 0 }
 0x433   : > { %1013 = vmatpush.bf16.xpose.msrb.mxu2 %v1004_v24 }
 0x436   : > { %v965_v26 = vpop.xlane.xlu1 %964 }
 0x437   : > { %1472 = vrcp.f32 %v965_v26 }
 0x43a   : > { %1325 = vmatmul.msk.bf16.vlgmr.msrb.gmra.mxu2 %vm932_vm13, %v851_v27 }
 0x43d   : > { %v1473_v28 = vpop.eup %1472 }
 0x43e   : > { %v968_v29 = vpop.xlane.xlu2 %967  ;;  %v975_v30 = vmul.f32 %v1473_v28, %v1465_v8 }
 0x43f   : > { %1474 = vrcp.f32 %v968_v29 }
 0x440   : > { %v979_v31 = vpack.c.bf16 %v975_v30, %v975_v30 }
 0x442   : > { %v1023_v32 = vsel %vm932_vm13, %v979_v31, 0 }
 0x443   : > { %1032 = vmatpush.bf16.xpose.msrb.mxu3 %v1023_v32 }
 0x445   : > { %v1475_v34 = vpop.eup %1474 }
 0x446   : > { %v976_v36 = vmul.f32 %v1475_v34, %v1467_v11 }
 0x448   : > { %v980_v37 = vpack.c.bf16 %v976_v36, %v976_v36 }
 0x44a   : > { %v1042_v38 = vsel %vm932_vm13, %v980_v37, 0  ;;  %1326 = vmatmul.msk.bf16.vlgmr.msrb.gmra.mxu3 %vm932_vm13, %v852_v35 }
 0x44b   : > { %1051 = vmatpush.bf16.xpose.msra.mxu0 %v1042_v38 }
 0x452   : > { %1327 = vmatmul.msk.bf16.vlgmr.msra.gmra.mxu0 %vm932_vm13, %v853_v40 }
 0x4a7   : > { %v996_v41 = vpop.f32.mrf.mxu1 }
 0x4a8   : > { %1057 = vxpose.xlu0.b32.start [1/4] (short) (narrow) %v996_v41, 8 }
 0x4af   : > { %v998_v42 = vpop.f32.mrf.mxu1 }
 0x4bd   : > { %v1015_v45 = vpop.f32.mrf.mxu2 }
 0x4be   : > { %1058 = vxpose.xlu0.b32.cont [2/4] (short) (narrow) %v1015_v45, 8 }
 0x4c5   : > { %v1017_v46 = vpop.f32.mrf.mxu2 }
 0x4cd   : > { %v1034_v47 = vpop.f32.mrf.mxu3 }
 0x4ce   : > { %1059 = vxpose.xlu0.b32.cont [3/4] (short) (narrow) %v1034_v47, 8 }
 0x4cf   : > { %v1053_v48 = vpop.f32.mrf.mxu0 }
 0x4d5   : > { %v1036_v49 = vpop.f32.mrf.mxu3 }
 0x4d6   : > { %1060 = vxpose.xlu0.b32.end [4/4] (short) (narrow) %v1053_v48, 8 }
 0x4d7   : > { %v1055_v50 = vpop.f32.mrf.mxu0 }
 0x562   : > { %v1073_v51 = vpop.trf.xlu0 }
 0x563   : > { %v1089_v52 = vpack.c.bf16 %v1073_v51, %v1073_v51 }
 0x565   : > { %1336 = vmatmul.msk.bf16.vlgmr.msra.gmra.mxu1 %vm490_vm0, %v1089_v52 }
 0x5e2   : > { %v1118_v53 = vpop.f32.mrf.mxu1 }
 0x5e3   : > { %1122 = vst.msk [vmem:[%s484_s20] sm:$0xff] %vm490_vm0, %v1118_v53 }
 0x5e4   : > { %1683 = shalt.err (!%p1680_p9)
}
 0x5e5   : > { %1370 = dma.vmem_to_hbm [thread:$0]  (%p1888_p3), %s1137_s30, 128, %s1139_s28, %s1124_s21  }
 0x5ea   : > { %v1120_v54 = vpop.f32.mrf.mxu1 }
 0x5eb PF: > { %s2095_s13 = sld [smem:[#allocation20_spill]]  ;;  %p2097_p12 = scmp.ge.s32.totalorder %s1738_s16, 2 }
 0x5ed   : > { %p1393_p13 = pnand %p2097_p12, %p1839_p6 }
 0x5ef   : > { %p1394_p0 = pneg %p1393_p13 }
 0x5f1   : > { %s1150_s26 = sand.u32 1, %s2095_s13  }
 0x5f2   : > { %s1151_s9 = scalar_lea.sflag [#allocation4], %s1150_s26 }
 0x5f3   : > { %1721 = dma.done.wait (%p1394_p0), %s1151_s9, 128  }
 0x5f4   : > { %1723 = vsyncadd (%p1394_p0), %s1151_s9, 4294967168  ;;  %s2098_s16 = sld [smem:[#allocation23_spill]]  ;;  %s2101_s13 = smov %s1730_s14 }
 0x5f5   : > { %s2099_s6 = sld [smem:[#allocation21_spill]] }
 0x5f6   : > { %s2100_s15 = sld [smem:[#allocation24_spill]] }
 0x5fa   : > { %p28_p5 = scmp.ge.s32.totalorder %s2098_s16, 4  }
 0x5fb   : > { %s2102_s14 = smov %s2099_s6 }
 0x5fc   :  { %30 = sbr.rel (!%p28_p5) target bundleno = 15 (0xf), region = 134 }
 0x601   :  { %1157 = vsyncpa [#allocation3], 1 }
 0x602   :  { %1159 = vsyncpa [#allocation3 + $0x1], 1 }
 0x603   :  { %1160 = vsyncpa [#allocation6], 1 }
 0x604   :  { %1162 = vsyncpa [#allocation6 + $0x1], 1 }
 0x605   :  { %1163 = vsyncpa [#allocation9], 1 }
 0x606   :  { %1164 = vsyncpa [#allocation12], 1 }
 0x607   :  { %1165 = vsyncpa [#allocation4], 1 }
 0x608   :  { %1167 = vsyncpa [#allocation4 + $0x1], 1 }

</bundles_post_ra>
